<compile_context>
chip_gen: v5e
topology: v5e:2x2
jax: 0.10.0
libtpu: 0.0.40
codegen_flags: <defaults>
</compile_context>

<pallas_src>
import jax
import jax.numpy as jnp
from jax import lax
from jax.experimental import pallas as pl
from jax.experimental.pallas import tpu as pltpu

EPS = 1e-5  # PyTorch BatchNorm1d default eps


def _round_up(x, m):
    return (x + m - 1) // m * m


def _hardswish(x):
    return x * jnp.clip(x + 3.0, 0.0, 6.0) * (1.0 / 6.0)


def _vpu_matmul(w, z):
    """(O, K) @ (K, M) with tiny static K as unrolled VPU broadcast-FMAs.

    Keeps these >97%-padding products off the MXU push -> result-FIFO pop
    path (the kernel is a pure latency chain)."""
    acc = w[:, 0:1] * z[0:1, :]
    for j in range(1, z.shape[0]):
        acc = acc + w[:, j:j + 1] * z[j:j + 1, :]
    return acc


def _build_kernel(n, c, t, v, oc):
    L = t + v

    def kernel(xt_ref, xv_ref, p_ref, avg_ref, o_ref):
        # ---- unpack the packed parameter slab (static slices = free views) --
        wt = p_ref[0:t, 0:1]                    # (t, 1)     TimeConv weight
        wv = p_ref[0:v, 1:2]                    # (v, 1)     ViewConv weight
        gs = p_ref[0:oc, 2:3]                   # (oc, 1)    SumConv BN gamma
        bs = p_ref[0:oc, 3:4]                   # (oc, 1)    SumConv BN beta
        b2 = p_ref[0:oc + c, 4:5]               # (oc+c, 1)  [b_time2 ; b_view2]
        ws = p_ref[0:oc, 5:5 + c]               # (oc, c)    SumConv weight
        w2 = p_ref[0:oc + c, 5 + c:5 + c + oc]  # (oc+c, oc) [w_time2 ; w_view2]

        # ---- stage 1: {Time,View}Conv = 1x1 Conv1d(K -> 1) + BatchNorm1d(1)
        # + Hardswish over every (sample, position) as one (K, M) slab.
        # K <= 25 so it is a VPU broadcast-mul + sublane sum (MXU stays free).
        # The conv bias is dropped: a constant added right before the
        # train-mode BN mean subtraction cancels exactly.  BN(1) affine is at
        # its default (weight=1, bias=0), matching the module as constructed.
        def conv1_bn_hswish(x_km, w_k1):
            y = jnp.sum(x_km * w_k1, axis=0, keepdims=True)          # (1, M)
            m = jnp.mean(y)
            var = jnp.mean(jnp.square(y - m))
            return _hardswish((y - m) * lax.rsqrt(var + EPS))

        yt = conv1_bn_hswish(xt_ref[...], wt)                        # (1, c*v*n)
        yv = conv1_bn_hswish(xv_ref[...], wv)                        # (1, c*t*n)

        # ---- torch.cat([x_time, x_view], 2).view(-1, c, t+25) ----
        # Columns are (flat position p, sample i) with i minor, so the exact
        # per-sample flat concat+reshape is c contiguous lane slices stacked
        # on the sublane axis (cost scales with c, not batch size).
        flat = jnp.concatenate([yt, yv], axis=1)                     # (1, c*L*n)
        z = jnp.concatenate(
            [flat[:, ci * L * n:(ci + 1) * L * n] for ci in range(c)],
            axis=0)                                                  # (c, n*L)

        # ---- stage 2a: SumConv (c -> oc, k=1) + train-mode BN (two-pass
        # variance) + Hardswish.  Conv bias cancels through BN (dropped);
        # K=c is tiny, so stay on the VPU.
        s = _vpu_matmul(ws, z)                                       # (oc, n*L)
        m = jnp.mean(s, axis=1, keepdims=True)
        var = jnp.mean(jnp.square(s - m), axis=1, keepdims=True)
        s = _hardswish((s - m) * lax.rsqrt(var + EPS) * gs + bs)
        # TODO(synk): BatchNorm running-statistics updates (training-time side
        # effect) are not produced; forward outputs are unaffected.

        # ---- stage 2b: batch mean for every position with ONE constant
        # averaging matmul (the only MXU op; avg built in the wrapper), then
        # exploit linearity mean_i(Conv2(x_i)) == Conv2(mean_i(x_i)) and run
        # TimeConv2 + ViewConv2 as one stacked VPU product + one sigmoid,
        # stored as a single lane-dense (oc+c, 128k) slab.
        mean_all = jnp.dot(s, avg_ref[...],
                           preferred_element_type=jnp.float32)       # (oc, Lpad)
        o_ref[...] = jax.nn.sigmoid(_vpu_matmul(w2, mean_all) + b2)

    return kernel


def _pack_params(params, c, t, v, oc):
    """Pack all (post-cancellation) parameters into one lane-padded f32 slab.

    Column layout (rows are sublanes, everything zero-padded):
      0: w_time (t)   1: w_view (v)   2: bn gamma (oc)   3: bn beta (oc)
      4: [b_time2; b_view2] (oc+c)
      5 .. 5+c-1        : w_sum (oc, c)
      5+c .. 5+c+oc-1   : [w_time2; w_view2] (oc+c, oc)
    """
    rows = _round_up(max(t, v, oc + c), 8)

    def col(vec):
        vec = vec.reshape(-1).astype(jnp.float32)
        return jnp.pad(vec, (0, rows - vec.shape[0]))[:, None]

    def block(mat):
        mat = mat.astype(jnp.float32)
        return jnp.pad(mat, ((0, rows - mat.shape[0]), (0, 0)))

    slab = jnp.concatenate([
        col(params["w_time"]),
        col(params["w_view"]),
        col(params["bn_sum_gamma"]),
        col(params["bn_sum_beta"]),
        col(jnp.concatenate([params["b_time2"].reshape(-1),
                             params["b_view2"].reshape(-1)])),
        block(params["w_sum"]),
        block(jnp.concatenate([params["w_time2"], params["w_view2"]], axis=0)),
    ], axis=1)
    lanes = _round_up(slab.shape[1], 128)
    return jnp.pad(slab, ((0, 0), (0, lanes - slab.shape[1])))


def ycz_att_forward(x, params):
    n, c, t, v = x.shape
    oc = params["w_sum"].shape[0]
    L = t + v
    l_pad = _round_up(L, 128)

    # Input-side layout glue (free XLA transposes): each 1x1-conv reduction
    # axis leads (sublanes); columns are ordered (c, position, sample) with
    # the batch index minor so the fused kernel never reshapes.
    xt_g = jnp.transpose(x, (2, 1, 3, 0)).reshape(t, c * v * n).astype(jnp.float32)
    xv_g = jnp.transpose(x, (3, 1, 2, 0)).reshape(v, c * t * n).astype(jnp.float32)

    # One packed parameter slab (b_time / b_view / b_sum are dropped: they
    # cancel through the train-mode BatchNorm mean subtraction).
    slab = _pack_params(params, c, t, v, oc)

    # Constant batch-averaging matrix: stage-2 activation columns are
    # (position l, sample i) with i minor, so the batch mean is one matmul
    # with this matrix.  Compile-time constant, lane-padded to 128 so the
    # kernel's single output slab is lane-dense (unmasked stores).
    avg = jnp.repeat(jnp.eye(L, dtype=jnp.float32), n, axis=0) * (1.0 / n)
    avg = jnp.pad(avg, ((0, 0), (0, l_pad - L)))                  # (n*L, Lpad)

    def vmem():
        return pl.BlockSpec(memory_space=pltpu.MemorySpace.VMEM)

    out = pl.pallas_call(
        _build_kernel(n, c, t, v, oc),
        out_shape=jax.ShapeDtypeStruct((oc + c, l_pad), jnp.float32),
        in_specs=[vmem() for _ in range(4)],
        out_specs=vmem(),
        # TODO(synk): if n*c*(t+v) ever grows, add a grid over batch/position
        # blocks with (8,128)-aligned tiles and dimension_semantics=
        # ("parallel", ...) (v7x has 2 TensorCores) plus an explicit
        # CompilerParams(vmem_limit_bytes=...); re-derive the gridding
        # threshold at ~half the v6e shape since v7x has 64 MiB physical VMEM.
    )(xt_g, xv_g, slab, avg)

    ot = out[:oc, :t]                 # TimeConv2 branch, batch-averaged
    ov = out[oc:oc + c, t:L]          # ViewConv2 branch, batch-averaged
    x_time = ot[None]                 # (1, out_channels, in_time)
    x_view = jnp.transpose(ov)[None]  # (1, 25, in_channels) == permute(0,2,1)
    return x_time, x_view


def init_params(key, in_channels, out_channels, in_time):
    """Deterministic init mirroring the module's shapes (kaiming fan_out for
    conv weights, uniform for conv biases, BN defaults weight=1/bias=0).
    b_time/b_view/b_sum are kept for structural fidelity but are unused by the
    fused forward (they cancel through training-mode BatchNorm)."""
    c, oc, t = in_channels, out_channels, in_time
    ks = jax.random.split(key, 10)

    def kaiming(k, shape, fan_out):
        return jax.random.normal(k, shape, jnp.float32) * jnp.sqrt(2.0 / fan_out)

    def unif(k, shape, fan_in):
        b = 1.0 / jnp.sqrt(float(fan_in))
        return jax.random.uniform(k, shape, jnp.float32, -b, b)

    return {
        "w_view": kaiming(ks[0], (1, 25), 1),       # Conv1d(25 -> 1, k=1)
        "b_view": unif(ks[1], (1, 1), 25),
        "w_time": kaiming(ks[2], (1, t), 1),        # Conv1d(t -> 1, k=1)
        "b_time": unif(ks[3], (1, 1), t),
        "w_sum": kaiming(ks[4], (oc, c), oc),       # Conv1d(c -> oc, k=1)
        "b_sum": unif(ks[5], (oc, 1), c),
        "bn_sum_gamma": jnp.ones((oc, 1), jnp.float32),
        "bn_sum_beta": jnp.zeros((oc, 1), jnp.float32),
        "w_time2": kaiming(ks[6], (oc, oc), oc),    # Conv1d(oc -> oc, k=1)
        "b_time2": unif(ks[7], (oc, 1), oc),
        "w_view2": kaiming(ks[8], (c, oc), c),      # Conv1d(oc -> c, k=1)
        "b_view2": unif(ks[9], (c, 1), oc),
    }


if __name__ == "__main__":
    key = jax.random.PRNGKey(0)
    k_x, k_p = jax.random.split(key)

    N, C, T, V = 2, 4, 8, 25   # V must be 25 (ViewConv has in_channels=25)
    OUT_C = 6

    x = jax.random.normal(k_x, (N, C, T, V), jnp.float32)
    params = init_params(k_p, C, OUT_C, T)

    fwd = jax.jit(ycz_att_forward)
    x_time, x_view = fwd(x, params)
    jax.block_until_ready((x_time, x_view))

    assert x_time.shape == (1, OUT_C, T), x_time.shape
    assert x_view.shape == (1, V, C), x_view.shape
    assert bool(jnp.all(jnp.isfinite(x_time))) and bool(jnp.all(jnp.isfinite(x_view)))
    print("KERNEL_OK")
</pallas_src>

<mosaic_0001>
module attributes {stable_mosaic.version = 11 : i64} {
  func.func @kernel(%arg0: memref<8x200xf32, #tpu.memory_space<vmem>>, %arg1: memref<25x64xf32, #tpu.memory_space<vmem>>, %arg2: memref<32x128xf32, #tpu.memory_space<vmem>>, %arg3: memref<66x128xf32, #tpu.memory_space<vmem>>, %arg4: memref<10x128xf32, #tpu.memory_space<vmem>>) attributes {dimension_semantics = [], scalar_prefetch = 0 : i64, scratch_operands = 0 : i64, tpu.core_type = #tpu.core_type<tc>} {
    %c0 = arith.constant 0 : index
    %c0_0 = arith.constant 0 : index
    %0 = vector.load %arg2[%c0, %c0_0] : memref<32x128xf32, #tpu.memory_space<vmem>>, vector<8x1xf32>
    %c0_1 = arith.constant 0 : index
    %c1 = arith.constant 1 : index
    %1 = vector.load %arg2[%c0_1, %c1] : memref<32x128xf32, #tpu.memory_space<vmem>>, vector<25x1xf32>
    %c0_2 = arith.constant 0 : index
    %c2 = arith.constant 2 : index
    %2 = vector.load %arg2[%c0_2, %c2] : memref<32x128xf32, #tpu.memory_space<vmem>>, vector<6x1xf32>
    %c0_3 = arith.constant 0 : index
    %c3 = arith.constant 3 : index
    %3 = vector.load %arg2[%c0_3, %c3] : memref<32x128xf32, #tpu.memory_space<vmem>>, vector<6x1xf32>
    %c0_4 = arith.constant 0 : index
    %c4 = arith.constant 4 : index
    %4 = vector.load %arg2[%c0_4, %c4] : memref<32x128xf32, #tpu.memory_space<vmem>>, vector<10x1xf32>
    %c0_5 = arith.constant 0 : index
    %c5 = arith.constant 5 : index
    %5 = vector.load %arg2[%c0_5, %c5] : memref<32x128xf32, #tpu.memory_space<vmem>>, vector<6x4xf32>
    %c0_6 = arith.constant 0 : index
    %c9 = arith.constant 9 : index
    %6 = vector.load %arg2[%c0_6, %c9] : memref<32x128xf32, #tpu.memory_space<vmem>>, vector<10x6xf32>
    %c0_7 = arith.constant 0 : index
    %c0_8 = arith.constant 0 : index
    %7 = vector.load %arg0[%c0_7, %c0_8] : memref<8x200xf32, #tpu.memory_space<vmem>>, vector<8x200xf32>
    %8 = vector.broadcast %0 : vector<8x1xf32> to vector<8x200xf32>
    %9 = arith.mulf %7, %8 : vector<8x200xf32>
    %cst = arith.constant dense<0.000000e+00> : vector<200xf32>
    %10 = vector.multi_reduction <add>, %9, %cst [0] : vector<8x200xf32> to vector<200xf32>
    %11 = vector.shape_cast %10 : vector<200xf32> to vector<1x200xf32>
    %12 = vector.shape_cast %11 : vector<1x200xf32> to vector<1x1x200xf32>
    %cst_9 = arith.constant dense<0.000000e+00> : vector<1xf32>
    %13 = vector.multi_reduction <add>, %12, %cst_9 [1, 2] : vector<1x1x200xf32> to vector<1xf32>
    %14 = vector.shape_cast %13 : vector<1xf32> to vector<1x1x1xf32>
    %15 = vector.extract %14[0, 0, 0] : f32 from vector<1x1x1xf32>
    %cst_10 = arith.constant 2.000000e+02 : f32
    %16 = arith.divf %15, %cst_10 : f32
    %17 = vector.broadcast %16 : f32 to vector<1x200xf32>
    %18 = arith.subf %11, %17 : vector<1x200xf32>
    %19 = arith.mulf %18, %18 : vector<1x200xf32>
    %20 = vector.shape_cast %19 : vector<1x200xf32> to vector<1x1x200xf32>
    %cst_11 = arith.constant dense<0.000000e+00> : vector<1xf32>
    %21 = vector.multi_reduction <add>, %20, %cst_11 [1, 2] : vector<1x1x200xf32> to vector<1xf32>
    %22 = vector.shape_cast %21 : vector<1xf32> to vector<1x1x1xf32>
    %23 = vector.extract %22[0, 0, 0] : f32 from vector<1x1x1xf32>
    %cst_12 = arith.constant 2.000000e+02 : f32
    %24 = arith.divf %23, %cst_12 : f32
    %25 = vector.broadcast %16 : f32 to vector<1x200xf32>
    %26 = arith.subf %11, %25 : vector<1x200xf32>
    %cst_13 = arith.constant 9.99999974E-6 : f32
    %27 = arith.addf %24, %cst_13 : f32
    %28 = math.rsqrt %27 : f32
    %29 = vector.broadcast %28 : f32 to vector<1x200xf32>
    %30 = arith.mulf %26, %29 : vector<1x200xf32>
    %cst_14 = arith.constant 3.000000e+00 : f32
    %31 = vector.broadcast %cst_14 : f32 to vector<1x200xf32>
    %32 = arith.addf %30, %31 : vector<1x200xf32>
    %cst_15 = arith.constant 0.000000e+00 : f32
    %cst_16 = arith.constant 6.000000e+00 : f32
    %33 = vector.broadcast %cst_15 : f32 to vector<1x200xf32>
    %34 = arith.maximumf %33, %32 : vector<1x200xf32>
    %35 = vector.broadcast %cst_16 : f32 to vector<1x200xf32>
    %36 = arith.minimumf %35, %34 : vector<1x200xf32>
    %37 = arith.mulf %30, %36 : vector<1x200xf32>
    %cst_17 = arith.constant 0.166666672 : f32
    %38 = vector.broadcast %cst_17 : f32 to vector<1x200xf32>
    %39 = arith.mulf %37, %38 : vector<1x200xf32>
    %c0_18 = arith.constant 0 : index
    %c0_19 = arith.constant 0 : index
    %40 = vector.load %arg1[%c0_18, %c0_19] : memref<25x64xf32, #tpu.memory_space<vmem>>, vector<25x64xf32>
    %41 = vector.broadcast %1 : vector<25x1xf32> to vector<25x64xf32>
    %42 = arith.mulf %40, %41 : vector<25x64xf32>
    %cst_20 = arith.constant dense<0.000000e+00> : vector<64xf32>
    %43 = vector.multi_reduction <add>, %42, %cst_20 [0] : vector<25x64xf32> to vector<64xf32>
    %44 = vector.shape_cast %43 : vector<64xf32> to vector<1x64xf32>
    %45 = vector.shape_cast %44 : vector<1x64xf32> to vector<1x1x64xf32>
    %cst_21 = arith.constant dense<0.000000e+00> : vector<1xf32>
    %46 = vector.multi_reduction <add>, %45, %cst_21 [1, 2] : vector<1x1x64xf32> to vector<1xf32>
    %47 = vector.shape_cast %46 : vector<1xf32> to vector<1x1x1xf32>
    %48 = vector.extract %47[0, 0, 0] : f32 from vector<1x1x1xf32>
    %cst_22 = arith.constant 6.400000e+01 : f32
    %49 = arith.divf %48, %cst_22 : f32
    %50 = vector.broadcast %49 : f32 to vector<1x64xf32>
    %51 = arith.subf %44, %50 : vector<1x64xf32>
    %52 = arith.mulf %51, %51 : vector<1x64xf32>
    %53 = vector.shape_cast %52 : vector<1x64xf32> to vector<1x1x64xf32>
    %cst_23 = arith.constant dense<0.000000e+00> : vector<1xf32>
    %54 = vector.multi_reduction <add>, %53, %cst_23 [1, 2] : vector<1x1x64xf32> to vector<1xf32>
    %55 = vector.shape_cast %54 : vector<1xf32> to vector<1x1x1xf32>
    %56 = vector.extract %55[0, 0, 0] : f32 from vector<1x1x1xf32>
    %cst_24 = arith.constant 6.400000e+01 : f32
    %57 = arith.divf %56, %cst_24 : f32
    %58 = vector.broadcast %49 : f32 to vector<1x64xf32>
    %59 = arith.subf %44, %58 : vector<1x64xf32>
    %cst_25 = arith.constant 9.99999974E-6 : f32
    %60 = arith.addf %57, %cst_25 : f32
    %61 = math.rsqrt %60 : f32
    %62 = vector.broadcast %61 : f32 to vector<1x64xf32>
    %63 = arith.mulf %59, %62 : vector<1x64xf32>
    %cst_26 = arith.constant 3.000000e+00 : f32
    %64 = vector.broadcast %cst_26 : f32 to vector<1x64xf32>
    %65 = arith.addf %63, %64 : vector<1x64xf32>
    %cst_27 = arith.constant 0.000000e+00 : f32
    %cst_28 = arith.constant 6.000000e+00 : f32
    %66 = vector.broadcast %cst_27 : f32 to vector<1x64xf32>
    %67 = arith.maximumf %66, %65 : vector<1x64xf32>
    %68 = vector.broadcast %cst_28 : f32 to vector<1x64xf32>
    %69 = arith.minimumf %68, %67 : vector<1x64xf32>
    %70 = arith.mulf %63, %69 : vector<1x64xf32>
    %cst_29 = arith.constant 0.166666672 : f32
    %71 = vector.broadcast %cst_29 : f32 to vector<1x64xf32>
    %72 = arith.mulf %70, %71 : vector<1x64xf32>
    %73 = tpu.concatenate %39, %72 in 1 : vector<1x200xf32>, vector<1x64xf32> -> vector<1x264xf32>
    %74 = vector.extract_strided_slice %73 {offsets = [0, 0], sizes = [1, 66], strides = [1, 1]} : vector<1x264xf32> to vector<1x66xf32>
    %75 = vector.extract_strided_slice %73 {offsets = [0, 66], sizes = [1, 66], strides = [1, 1]} : vector<1x264xf32> to vector<1x66xf32>
    %76 = vector.extract_strided_slice %73 {offsets = [0, 132], sizes = [1, 66], strides = [1, 1]} : vector<1x264xf32> to vector<1x66xf32>
    %77 = vector.extract_strided_slice %73 {offsets = [0, 198], sizes = [1, 66], strides = [1, 1]} : vector<1x264xf32> to vector<1x66xf32>
    %78 = tpu.concatenate %74, %75, %76, %77 in 0 : vector<1x66xf32>, vector<1x66xf32>, vector<1x66xf32>, vector<1x66xf32> -> vector<4x66xf32>
    %79 = vector.extract_strided_slice %5 {offsets = [0, 0], sizes = [6, 1], strides = [1, 1]} : vector<6x4xf32> to vector<6x1xf32>
    %80 = vector.extract_strided_slice %78 {offsets = [0, 0], sizes = [1, 66], strides = [1, 1]} : vector<4x66xf32> to vector<1x66xf32>
    %81 = vector.broadcast %79 : vector<6x1xf32> to vector<6x66xf32>
    %82 = vector.broadcast %80 : vector<1x66xf32> to vector<6x66xf32>
    %83 = arith.mulf %81, %82 : vector<6x66xf32>
    %84 = vector.extract_strided_slice %5 {offsets = [0, 1], sizes = [6, 1], strides = [1, 1]} : vector<6x4xf32> to vector<6x1xf32>
    %85 = vector.extract_strided_slice %78 {offsets = [1, 0], sizes = [1, 66], strides = [1, 1]} : vector<4x66xf32> to vector<1x66xf32>
    %86 = vector.broadcast %84 : vector<6x1xf32> to vector<6x66xf32>
    %87 = vector.broadcast %85 : vector<1x66xf32> to vector<6x66xf32>
    %88 = arith.mulf %86, %87 : vector<6x66xf32>
    %89 = arith.addf %83, %88 : vector<6x66xf32>
    %90 = vector.extract_strided_slice %5 {offsets = [0, 2], sizes = [6, 1], strides = [1, 1]} : vector<6x4xf32> to vector<6x1xf32>
    %91 = vector.extract_strided_slice %78 {offsets = [2, 0], sizes = [1, 66], strides = [1, 1]} : vector<4x66xf32> to vector<1x66xf32>
    %92 = vector.broadcast %90 : vector<6x1xf32> to vector<6x66xf32>
    %93 = vector.broadcast %91 : vector<1x66xf32> to vector<6x66xf32>
    %94 = arith.mulf %92, %93 : vector<6x66xf32>
    %95 = arith.addf %89, %94 : vector<6x66xf32>
    %96 = vector.extract_strided_slice %5 {offsets = [0, 3], sizes = [6, 1], strides = [1, 1]} : vector<6x4xf32> to vector<6x1xf32>
    %97 = vector.extract_strided_slice %78 {offsets = [3, 0], sizes = [1, 66], strides = [1, 1]} : vector<4x66xf32> to vector<1x66xf32>
    %98 = vector.broadcast %96 : vector<6x1xf32> to vector<6x66xf32>
    %99 = vector.broadcast %97 : vector<1x66xf32> to vector<6x66xf32>
    %100 = arith.mulf %98, %99 : vector<6x66xf32>
    %101 = arith.addf %95, %100 : vector<6x66xf32>
    %cst_30 = arith.constant dense<0.000000e+00> : vector<6xf32>
    %102 = vector.multi_reduction <add>, %101, %cst_30 [1] : vector<6x66xf32> to vector<6xf32>
    %103 = vector.shape_cast %102 : vector<6xf32> to vector<6x1xf32>
    %cst_31 = arith.constant 6.600000e+01 : f32
    %104 = vector.broadcast %cst_31 : f32 to vector<6x1xf32>
    %105 = arith.divf %103, %104 : vector<6x1xf32>
    %106 = vector.broadcast %105 : vector<6x1xf32> to vector<6x66xf32>
    %107 = arith.subf %101, %106 : vector<6x66xf32>
    %108 = arith.mulf %107, %107 : vector<6x66xf32>
    %cst_32 = arith.constant dense<0.000000e+00> : vector<6xf32>
    %109 = vector.multi_reduction <add>, %108, %cst_32 [1] : vector<6x66xf32> to vector<6xf32>
    %110 = vector.shape_cast %109 : vector<6xf32> to vector<6x1xf32>
    %cst_33 = arith.constant 6.600000e+01 : f32
    %111 = vector.broadcast %cst_33 : f32 to vector<6x1xf32>
    %112 = arith.divf %110, %111 : vector<6x1xf32>
    %113 = vector.broadcast %105 : vector<6x1xf32> to vector<6x66xf32>
    %114 = arith.subf %101, %113 : vector<6x66xf32>
    %cst_34 = arith.constant 9.99999974E-6 : f32
    %115 = vector.broadcast %cst_34 : f32 to vector<6x1xf32>
    %116 = arith.addf %112, %115 : vector<6x1xf32>
    %117 = math.rsqrt %116 : vector<6x1xf32>
    %118 = vector.broadcast %117 : vector<6x1xf32> to vector<6x66xf32>
    %119 = arith.mulf %114, %118 : vector<6x66xf32>
    %120 = vector.broadcast %2 : vector<6x1xf32> to vector<6x66xf32>
    %121 = arith.mulf %119, %120 : vector<6x66xf32>
    %122 = vector.broadcast %3 : vector<6x1xf32> to vector<6x66xf32>
    %123 = arith.addf %121, %122 : vector<6x66xf32>
    %cst_35 = arith.constant 3.000000e+00 : f32
    %124 = vector.broadcast %cst_35 : f32 to vector<6x66xf32>
    %125 = arith.addf %123, %124 : vector<6x66xf32>
    %cst_36 = arith.constant 0.000000e+00 : f32
    %cst_37 = arith.constant 6.000000e+00 : f32
    %126 = vector.broadcast %cst_36 : f32 to vector<6x66xf32>
    %127 = arith.maximumf %126, %125 : vector<6x66xf32>
    %128 = vector.broadcast %cst_37 : f32 to vector<6x66xf32>
    %129 = arith.minimumf %128, %127 : vector<6x66xf32>
    %130 = arith.mulf %123, %129 : vector<6x66xf32>
    %cst_38 = arith.constant 0.166666672 : f32
    %131 = vector.broadcast %cst_38 : f32 to vector<6x66xf32>
    %132 = arith.mulf %130, %131 : vector<6x66xf32>
    %c0_39 = arith.constant 0 : index
    %c0_40 = arith.constant 0 : index
    %133 = vector.load %arg3[%c0_39, %c0_40] : memref<66x128xf32, #tpu.memory_space<vmem>>, vector<66x128xf32>
    %cst_41 = arith.constant dense<0.000000e+00> : vector<6x128xf32>
    %134 = tpu.matmul %132, %133, %cst_41 {dimension_numbers = #tpu.dot_dimension_numbers<[1], [0], [0], [1], [0, 0, 1, 1], [], []>} : vector<6x66xf32>, vector<66x128xf32>, vector<6x128xf32> -> vector<6x128xf32>
    %135 = vector.extract_strided_slice %6 {offsets = [0, 0], sizes = [10, 1], strides = [1, 1]} : vector<10x6xf32> to vector<10x1xf32>
    %136 = vector.extract_strided_slice %134 {offsets = [0, 0], sizes = [1, 128], strides = [1, 1]} : vector<6x128xf32> to vector<1x128xf32>
    %137 = vector.broadcast %135 : vector<10x1xf32> to vector<10x128xf32>
    %138 = vector.broadcast %136 : vector<1x128xf32> to vector<10x128xf32>
    %139 = arith.mulf %137, %138 : vector<10x128xf32>
    %140 = vector.extract_strided_slice %6 {offsets = [0, 1], sizes = [10, 1], strides = [1, 1]} : vector<10x6xf32> to vector<10x1xf32>
    %141 = vector.extract_strided_slice %134 {offsets = [1, 0], sizes = [1, 128], strides = [1, 1]} : vector<6x128xf32> to vector<1x128xf32>
    %142 = vector.broadcast %140 : vector<10x1xf32> to vector<10x128xf32>
    %143 = vector.broadcast %141 : vector<1x128xf32> to vector<10x128xf32>
    %144 = arith.mulf %142, %143 : vector<10x128xf32>
    %145 = arith.addf %139, %144 : vector<10x128xf32>
    %146 = vector.extract_strided_slice %6 {offsets = [0, 2], sizes = [10, 1], strides = [1, 1]} : vector<10x6xf32> to vector<10x1xf32>
    %147 = vector.extract_strided_slice %134 {offsets = [2, 0], sizes = [1, 128], strides = [1, 1]} : vector<6x128xf32> to vector<1x128xf32>
    %148 = vector.broadcast %146 : vector<10x1xf32> to vector<10x128xf32>
    %149 = vector.broadcast %147 : vector<1x128xf32> to vector<10x128xf32>
    %150 = arith.mulf %148, %149 : vector<10x128xf32>
    %151 = arith.addf %145, %150 : vector<10x128xf32>
    %152 = vector.extract_strided_slice %6 {offsets = [0, 3], sizes = [10, 1], strides = [1, 1]} : vector<10x6xf32> to vector<10x1xf32>
    %153 = vector.extract_strided_slice %134 {offsets = [3, 0], sizes = [1, 128], strides = [1, 1]} : vector<6x128xf32> to vector<1x128xf32>
    %154 = vector.broadcast %152 : vector<10x1xf32> to vector<10x128xf32>
    %155 = vector.broadcast %153 : vector<1x128xf32> to vector<10x128xf32>
    %156 = arith.mulf %154, %155 : vector<10x128xf32>
    %157 = arith.addf %151, %156 : vector<10x128xf32>
    %158 = vector.extract_strided_slice %6 {offsets = [0, 4], sizes = [10, 1], strides = [1, 1]} : vector<10x6xf32> to vector<10x1xf32>
    %159 = vector.extract_strided_slice %134 {offsets = [4, 0], sizes = [1, 128], strides = [1, 1]} : vector<6x128xf32> to vector<1x128xf32>
    %160 = vector.broadcast %158 : vector<10x1xf32> to vector<10x128xf32>
    %161 = vector.broadcast %159 : vector<1x128xf32> to vector<10x128xf32>
    %162 = arith.mulf %160, %161 : vector<10x128xf32>
    %163 = arith.addf %157, %162 : vector<10x128xf32>
    %164 = vector.extract_strided_slice %6 {offsets = [0, 5], sizes = [10, 1], strides = [1, 1]} : vector<10x6xf32> to vector<10x1xf32>
    %165 = vector.extract_strided_slice %134 {offsets = [5, 0], sizes = [1, 128], strides = [1, 1]} : vector<6x128xf32> to vector<1x128xf32>
    %166 = vector.broadcast %164 : vector<10x1xf32> to vector<10x128xf32>
    %167 = vector.broadcast %165 : vector<1x128xf32> to vector<10x128xf32>
    %168 = arith.mulf %166, %167 : vector<10x128xf32>
    %169 = arith.addf %163, %168 : vector<10x128xf32>
    %170 = vector.broadcast %4 : vector<10x1xf32> to vector<10x128xf32>
    %171 = arith.addf %169, %170 : vector<10x128xf32>
    %172 = arith.negf %171 : vector<10x128xf32>
    %173 = math.exp %172 : vector<10x128xf32>
    %cst_42 = arith.constant 1.000000e+00 : f32
    %174 = vector.broadcast %cst_42 : f32 to vector<10x128xf32>
    %175 = arith.addf %174, %173 : vector<10x128xf32>
    %176 = arith.divf %174, %175 : vector<10x128xf32>
    %c0_43 = arith.constant 0 : index
    %c0_44 = arith.constant 0 : index
    %177 = vector.load %arg4[%c0_43, %c0_44] : memref<10x128xf32, #tpu.memory_space<vmem>>, vector<10x128xf32>
    tpu.vector_store %arg4[%c0_43, %c0_44], %176 {strides = array<i32>} : memref<10x128xf32, #tpu.memory_space<vmem>>, vector<10x128xf32>,
    return
  }
}

</mosaic_0001>

<bundles_post_ra>
// kernel: ycz_att_forward.1
= control target key start
LH: loop header
LB: loop body
LE: loop exit
PB: predicated region body
PF: predicated region fallthrough
CT: control target
= control target key end

     0   :  { %v584_v0 = vmov 0   ;;  %vm38_vm0 = vcmask 588800   ;;  %vm46_vm1 = vcmask 1040384   ;;  %vm48_vm2 = vcmask 581632   ;;  %s588_s14 = smov 62   ;;  %s589_s21 = smov 72   ;;  %s765_s2 = inlined_call_operand.vmem [shape: f32[32,128], index: 2, kind: input, shape index: {}]   ;;  %s766_s0 = inlined_call_operand.vmem [shape: f32[8,200], index: 0, kind: input, shape index: {}]   ;;  %s767_s1 = inlined_call_operand.vmem [shape: f32[25,64], index: 1, kind: input, shape index: {}]   ;;  %s768_s3 = inlined_call_operand.vmem [shape: f32[66,128], index: 3, kind: input, shape index: {}]   ;;  %s769_s4 = inlined_call_operand.vmem [shape: f32[10,128], index: 4, kind: output, shape index: {}]  }
   0x1   :  { %540 = vset.pattern.permute.xlu0 %v584_v0  ;;  %v634_v1 = vld [vmem:[%s765_s2] sm:$0xff]  ;;  %v24_v3 = vld [vmem:[%s766_s0 + $0x8] sm:$0xff]  ;;  %v585_v23 = vmov 200.0   ;;  %v586_v38 = vmov 1   ;;  %v19_v42 = vld [vmem:[%s765_s2 + $0x10] sm:$0xff]  ;;  %vm148_vm4 = vcmask 523264  }
   0x2   :  { %27 = vperm.xlu0 %540, %v634_v1   ;;  %v23_v2 = vld [vmem:[%s766_s0] sm:$0xff]  ;;  %564 = vrcp.f32 %v585_v23  ;;  %v18_v37 = vld [vmem:[%s765_s2 + $0x8] sm:$0xff]  ;;  %542 = vset.pattern.permute.xlu2 %v586_v38  ;;  %v20_v48 = vld [vmem:[%s765_s2 + $0x18] sm:$0x1]  ;;  %vm154_vm5 = vcmask 516096   ;;  %s594_s25 = smov 124  }
   0x3   :  { %541 = vset.pattern.permute.xlu1 %v586_v38  ;;  %131 = vperm.xlu2 %542, %v18_v37   ;;  %v122_v58 = vld [vmem:[%s767_s1 + $0x8] sm:$0xff]  ;;  %v123_v59 = vld [vmem:[%s767_s1 + $0x10] sm:$0xff]  ;;  %v121_v60 = vld [vmem:[%s767_s1] sm:$0xff]  ;;  %vm237_vm13 = vcmask 506880   ;;  %vm250_vm14 = vcmask 474112   ;;  %vm254_vm15 = vcmask 1041408  }
   0x4   :  { %v124_v63 = vld [vmem:[%s767_s1 + $0x18] sm:$0x1] }
   0x8   :  { %v565_v24 = vpop.eup %564 }
   0x9   :  { %v61_v25 = vmul.f32 200.0, %v565_v24  ;;  %vm65_vm3 = vweird.f32 %v565_v24 }
   0xb   :  { %v62_v26 = vsub.f32 1.0, %v61_v25  ;;  %136 = vperm.xlu2 %542, %v19_v42  }
   0xd   :  { %v63_v30 = vmul.f32 %v565_v24, %v62_v26 }
   0xf   :  { %v64_v33 = vadd.f32 %v565_v24, %v63_v30 }
  0x11   :  { %v66_v36 = vsel %vm65_vm3, %v565_v24, %v64_v33 }
  0x13   :  { %141 = vperm.xlu2 %542, %v20_v48  }
  0x5d   :  { %v132_v52 = vpop.permute.xlu2 %131 }
  0x5e   :  { %v145_v61 = vmul.f32 %v132_v52, %v122_v58 }
  0x65   :  { %v137_v57 = vpop.permute.xlu2 %136 }
  0x6d   :  { %v142_v62 = vpop.permute.xlu2 %141 }
  0x74   :  { %v28_v4 = vpop.permute.xlu0 %27 }
  0x75   :  { %v30_v5 = vmul.f32 %v28_v4, %v23_v2  ;;  %v31_v6 = vmul.f32 %v28_v4, %v24_v3  ;;  %v146_v2 = vmul.f32 %v137_v57, %v123_v59  ;;  %v150_v4 = vsel %vm148_vm4, %v145_v61, 0.0 }
  0x77   :  { %v32_v7 = vrot.slane %v30_v5, 4  ;;  %v39_v8 = vsel %vm38_vm0, %v31_v6, 0.0 }
  0x78   :  { %v40_v9 = vrot.slane %v39_v8, 4 }
  0x79   :  { %v33_v10 = vadd.f32 %v32_v7, %v30_v5  ;;  %v147_v5 = vmul.f32 %v142_v62, %v124_v63 }
  0x7a   :  { %v41_v11 = vadd.f32 %v40_v9, %v39_v8  ;;  %v152_v8 = vsel %vm148_vm4, %v146_v2, 0.0 }
  0x7b   :  { %v34_v12 = vrot.slane %v33_v10, 2 }
  0x7c   :  { %v42_v13 = vrot.slane %v41_v11, 2 }
  0x7d   :  { %v35_v14 = vadd.f32 %v34_v12, %v33_v10  ;;  %v155_v10 = vsel %vm154_vm5, %v147_v5, 0.0 }
  0x7e   :  { %v43_v15 = vadd.f32 %v42_v13, %v41_v11 }
  0x7f   :  { %v36_v16 = vrot.slane %v35_v14, 1 }
  0x80   :  { %v44_v17 = vrot.slane %v43_v15, 1 }
  0x81   :  { %v37_v18 = vadd.f32 %v36_v16, %v35_v14 }
  0x82   :  { %v45_v19 = vadd.f32 %v44_v17, %v43_v15 }
  0x83   :  { %v47_v20 = vsel %vm46_vm1, %v37_v18, 0.0 }
  0x84   :  { %v49_v21 = vsel %vm48_vm2, %v45_v19, 0.0 }
  0x85   :  { %v50_v22 = vadd.f32 %v49_v21, %v47_v20 }
  0x87   :  { %51 = vadd.xlane.f32.xlu0 %v50_v22 }
  0xfa   :  { %v52_v27 = vpop.xlane.xlu0 %51 }
  0xfb   :  { %v53_v28 = vrot.slane %v52_v27, 4 }
  0xfd   :  { %v54_v29 = vadd.f32 %v53_v28, %v52_v27 }
  0xff   :  { %v55_v31 = vrot.slane %v54_v29, 2 }
 0x101   :  { %v56_v32 = vadd.f32 %v55_v31, %v54_v29 }
 0x103   :  { %v57_v34 = vrot.slane %v56_v32, 1 }
 0x105   :  { %v58_v35 = vadd.f32 %v57_v34, %v56_v32  ;;  %v587_v34 = vmov 64.0  }
 0x107   :  { %502 = vpush %v58_v35 }
 0x108   :  { %504 = vpush %v66_v36 }
 0x138   :  { %s503_s22 = spop %502 }
 0x139   :  { %s649_s23 = spop %504 }
 0x13a   :  { %s68_s24 = smul.f32 %s649_s23, %s503_s22 }
 0x13c   :  { %v69_v39 = vstv %s68_s24  ;;  %s593_s24 = smov 58  }
 0x13d   :  { %v652_v40 = vsub.f32 %v37_v18, %v69_v39  ;;  %v654_v41 = vsub.f32 %v45_v19, %v69_v39 }
 0x13f   :  { %v72_v43 = vmul.f32 %v652_v40, %v652_v40  ;;  %v73_v44 = vmul.f32 %v654_v41, %v654_v41 }
 0x141   :  { %v74_v45 = vsel %vm46_vm1, %v72_v43, 0.0  ;;  %v75_v46 = vsel %vm48_vm2, %v73_v44, 0.0 }
 0x142   :  { %v76_v47 = vadd.f32 %v75_v46, %v74_v45 }
 0x144   :  { %77 = vadd.xlane.f32.xlu1 %v76_v47 }
 0x15d   :  { %126 = vperm.xlu1 %541, %v634_v1  }
 0x1b7   :  { %v78_v49 = vpop.xlane.xlu1 %77 }
 0x1b8   :  { %v79_v50 = vrot.slane %v78_v49, 4 }
 0x1ba   :  { %v80_v51 = vadd.f32 %v79_v50, %v78_v49 }
 0x1bc   :  { %v81_v53 = vrot.slane %v80_v51, 2 }
 0x1be   :  { %v82_v54 = vadd.f32 %v81_v53, %v80_v51 }
 0x1c0   :  { %v83_v55 = vrot.slane %v82_v54, 1 }
 0x1c2   :  { %v84_v56 = vadd.f32 %v83_v55, %v82_v54 }
 0x1c4   :  { %506 = vpush %v84_v56 }
 0x1cf   :  { %v127_v0 = vpop.permute.xlu1 %126 }
 0x1d0   :  { %v144_v3 = vmul.f32 %v127_v0, %v121_v60 }
 0x1d2   :  { %v149_v6 = vsel %vm148_vm4, %v144_v3, 0.0 }
 0x1d3   :  { %v151_v7 = vadd.f32 %v150_v4, %v149_v6 }
 0x1d5   :  { %v153_v9 = vadd.f32 %v152_v8, %v151_v7 }
 0x1d7   :  { %v156_v11 = vadd.f32 %v155_v10, %v153_v9 }
 0x1d9   :  { %v157_v12 = vrot.slane %v156_v11, 4 }
 0x1db   :  { %v158_v13 = vadd.f32 %v157_v12, %v156_v11 }
 0x1dd   :  { %v159_v14 = vrot.slane %v158_v13, 2 }
 0x1df   :  { %v160_v15 = vadd.f32 %v159_v14, %v158_v13 }
 0x1e1   :  { %v161_v16 = vrot.slane %v160_v15, 1 }
 0x1e3   :  { %v162_v17 = vadd.f32 %v161_v16, %v160_v15  ;;  %v590_v16 = vmov 8  }
 0x1e4   :  { %546 = vset.pattern.permute.xlu1 %v590_v16 }
 0x1e5   :  { %v163_v18 = vsel %vm154_vm5, %v162_v17, 0.0 }
 0x1e6   :  { %164 = vadd.xlane.f32.xlu2 %v163_v18 }
 0x1f5   :  { %s507_s1 = spop %506 }
 0x1f6   :  { %s94_s11 = smul.f32 %s507_s1, %s649_s23 }
 0x1f8   :  { %s95_s12 = sadd.f32 1e-05, %s94_s11 }
 0x1fa   :  { %v96_v19 = vstv %s95_s12 }
 0x1fb   :  { %566 = vrsqrt.f32 %v96_v19  ;;  %vm103_vm7 = vweird.f32 %v96_v19 }
 0x1fc   :  { %568 = vrcp.f32 %v587_v34 }
 0x201   :  { %v567_v20 = vpop.eup %566 }
 0x202   :  { %v98_v21 = vmul.f32 %v567_v20, %v96_v19  ;;  %vm104_vm6 = vweird.f32 %v567_v20  ;;  %v569_v36 = vpop.eup %568 }
 0x203   :  { %vm105_vm8 = vmor %vm103_vm7, %vm104_vm6  ;;  %v174_v37 = vmul.f32 64.0, %v569_v36  ;;  %vm178_vm9 = vweird.f32 %v569_v36  ;;  %vm340_vm6 = vcmask 539648  }
 0x204   :  { %v99_v22 = vmul.f32 %v567_v20, %v98_v21  ;;  %v592_v21 = vmov 5  }
 0x205   :  { %v175_v38 = vsub.f32 1.0, %v174_v37  ;;  %543 = vset.pattern.permute.xlu2 %v592_v21  ;;  %v332_v21 = vld [vmem:[%s768_s3 + $0x8] sm:$0xff] }
 0x206   :  { %v100_v23 = vmul.f32 0.5, %v99_v22 }
 0x208   :  { %v101_v24 = vsub.f32 1.5, %v100_v23 }
 0x20a   :  { %v102_v25 = vmul.f32 %v567_v20, %v101_v24 }
 0x20c   :  { %v106_v26 = vsel %vm105_vm8, %v567_v20, %v102_v25  ;;  %v701_v20 = vld [vmem:[%s765_s2] sm:$0x3f] }
 0x20d   :  { %508 = vpush %v106_v26  ;;  %v595_v26 = vmov 7  }
 0x23e   :  { %s684_s13 = spop %508 }
 0x23f   :  { %v108_v27 = vstv %s684_s13 }
 0x240   :  { %v109_v28 = vmul.f32 %v108_v27, %v652_v40  ;;  %v176_v40 = vmul.f32 %v569_v36, %v175_v38  ;;  %v110_v13 = vmul.f32 %v108_v27, %v654_v41 }
 0x242   :  { %v111_v29 = vadd.f32 3.0, %v109_v28  ;;  %v177_v46 = vadd.f32 %v569_v36, %v176_v40  ;;  %v112_v14 = vadd.f32 3.0, %v110_v13 }
 0x244   :  { %v113_v30 = vmax.f32 %v111_v29, 0.0  ;;  %v179_v49 = vsel %vm178_vm9, %v569_v36, %v177_v46  ;;  %v114_v15 = vmax.f32 %v112_v14, 0.0  ;;  %v334_v14 = vld [vmem:[%s768_s3 + $0x18] sm:$0xff] }
 0x246   :  { %v115_v31 = vmin.f32 %v113_v30, 6.0  ;;  %v116_v18 = vmin.f32 %v114_v15, 6.0 }
 0x248   :  { %v117_v32 = vmul.f32 %v115_v31, %v109_v28  ;;  %v118_v19 = vmul.f32 %v116_v18, %v110_v13  ;;  %v335_v13 = vld [vmem:[%s768_s3 + $0x20] sm:$0xff]  ;;  %v333_v18 = vld [vmem:[%s768_s3 + $0x10] sm:$0xff] }
 0x24a   :  { %v690_v33 = vmul.f32 0.16666667, %v117_v32  ;;  %v120_v22 = vmul.f32 0.16666667, %v118_v19  ;;  %v22_v19 = vld [vmem:[%s765_s2 + $0x8] sm:$0x3] }
 0x24c   :  { %v231_v35 = vrot.slane %v690_v33, 7 }
 0x24e   :  { %233 = vrot.lane.b32.xlu2 %v231_v35, %s588_s14 }
 0x256   :  { %260 = vperm.xlu2 %543, %v701_v20  }
 0x259   :  { %v165_v39 = vpop.xlane.xlu2 %164 }
 0x25a   :  { %v166_v42 = vrot.slane %v165_v39, 4 }
 0x25c   :  { %v167_v43 = vadd.f32 %v166_v42, %v165_v39 }
 0x25e   :  { %v168_v44 = vrot.slane %v167_v43, 2  ;;  %545 = vset.pattern.permute.xlu2 %v595_v26 }
 0x25f   :  { %273 = vperm.xlu2 %545, %v701_v20  }
 0x260   :  { %v169_v45 = vadd.f32 %v168_v44, %v167_v43 }
 0x262   :  { %v170_v47 = vrot.slane %v169_v45, 1 }
 0x264   :  { %v171_v48 = vadd.f32 %v170_v47, %v169_v45 }
 0x266   :  { %510 = vpush %v171_v48 }
 0x267   :  { %512 = vpush %v179_v49 }
 0x297   :  { %s511_s15 = spop %510 }
 0x298   :  { %s513_s16 = spop %512 }
 0x299   :  { %s181_s17 = smul.f32 %s513_s16, %s511_s15 }
 0x29b   :  { %v182_v50 = vstv %s181_s17 }
 0x29c   :  { %v183_v51 = vsub.f32 %v162_v17, %v182_v50  ;;  %v591_v17 = vmov 6  }
 0x29d   :  { %544 = vset.pattern.permute.xlu0 %v591_v17  ;;  %v601_v17 = vmov 12  }
 0x29e   :  { %v184_v52 = vmul.f32 %v183_v51, %v183_v51 }
 0x2a0   :  { %v185_v53 = vsel %vm154_vm5, %v184_v52, 0.0 }
 0x2a1   :  { %186 = vadd.xlane.f32.xlu1 %v185_v53 }
 0x2a8   :  { %v234_v30 = vpop.permute.xlu2 %233 }
 0x2b0   :  { %v261_v35 = vpop.permute.xlu2 %260 }
 0x2b9   :  { %v274_v45 = vpop.permute.xlu2 %273 }
 0x314   :  { %v187_v54 = vpop.xlane.xlu1 %186 }
 0x315   :  { %v188_v55 = vrot.slane %v187_v54, 4 }
 0x317   :  { %v189_v56 = vadd.f32 %v188_v55, %v187_v54 }
 0x319   :  { %v190_v57 = vrot.slane %v189_v56, 2 }
 0x31b   :  { %v191_v58 = vadd.f32 %v190_v57, %v189_v56  ;;  %v596_v56 = vmov 66.0   ;;  %v597_v57 = vmov 2  }
 0x31d   :  { %v192_v59 = vrot.slane %v191_v58, 1 }
 0x31f   :  { %v193_v60 = vadd.f32 %v192_v59, %v191_v58 }
 0x321   :  { %514 = vpush %v193_v60 }
 0x352   :  { %s515_s18 = spop %514 }
 0x353   :  { %s203_s19 = smul.f32 %s515_s18, %s513_s16 }
 0x355   :  { %s204_s20 = sadd.f32 1e-05, %s203_s19 }
 0x357   :  { %v205_v61 = vstv %s204_s20 }
 0x358   :  { %570 = vrsqrt.f32 %v205_v61  ;;  %vm212_vm11 = vweird.f32 %v205_v61 }
 0x359   :  { %572 = vrcp.f32 %v596_v56 }
 0x35e   :  { %v571_v62 = vpop.eup %570 }
 0x35f   :  { %v207_v63 = vmul.f32 %v571_v62, %v205_v61  ;;  %vm213_vm10 = vweird.f32 %v571_v62  ;;  %v573_v58 = vpop.eup %572  ;;  %v598_v61 = vmov 3  }
 0x360   :  { %vm214_vm12 = vmor %vm212_vm11, %vm213_vm10  ;;  %v291_v59 = vmul.f32 66.0, %v573_v58  ;;  %vm295_vm2 = vweird.f32 %v573_v58 }
 0x361   :  { %v208_v0 = vmul.f32 %v571_v62, %v207_v63 }
 0x362   :  { %v292_v60 = vsub.f32 1.0, %v291_v59 }
 0x363   :  { %v209_v2 = vmul.f32 0.5, %v208_v0 }
 0x365   :  { %v210_v3 = vsub.f32 1.5, %v209_v2 }
 0x367   :  { %v211_v4 = vmul.f32 %v571_v62, %v210_v3 }
 0x369   :  { %v215_v5 = vsel %vm214_vm12, %v571_v62, %v211_v4  ;;  %v293_v62 = vmul.f32 %v573_v58, %v292_v60 }
 0x36a   :  { %516 = vpush %v215_v5 }
 0x36b   :  { %v294_v63 = vadd.f32 %v573_v58, %v293_v62 }
 0x36d   :  { %v296_v0 = vsel %vm295_vm2, %v573_v58, %v294_v63 }
 0x39b   :  { %s517_s0 = spop %516 }
 0x39c   :  { %v217_v6 = vstv %s517_s0 }
 0x39d   :  { %v218_v7 = vmul.f32 %v217_v6, %v183_v51 }
 0x39f   :  { %v219_v8 = vadd.f32 3.0, %v218_v7 }
 0x3a1   :  { %v220_v9 = vmax.f32 %v219_v8, 0.0  ;;  %v338_v8 = vld [vmem:[%s768_s3 + $0x38] sm:$0xff] }
 0x3a3   :  { %v221_v10 = vmin.f32 %v220_v9, 6.0  ;;  %v599_v9 = vmov 10  }
 0x3a5   :  { %v222_v11 = vmul.f32 %v221_v10, %v218_v7  ;;  %v339_v7 = vld [vmem:[%s768_s3 + $0x40] sm:$0x3]  ;;  %v600_v10 = vmov 9  }
 0x3a6   :  { %498 = vmatpush.msk.msra.mxu0 %vm254_vm15, %v339_v7  ;;  %550 = vset.pattern.permute.xlu2 %v600_v10 }
 0x3a7   :  { %v223_v12 = vmul.f32 0.16666667, %v222_v11  ;;  %v337_v11 = vld [vmem:[%s768_s3 + $0x30] sm:$0xff] }
 0x3a8   :  { %355 = vmatpush.msra.mxu0 %v338_v8 }
 0x3a9   :  { %225 = vrot.lane.b32.xlu0 %v223_v12, %s589_s21  ;;  %v336_v12 = vld [vmem:[%s768_s3 + $0x28] sm:$0xff] }
 0x3aa   :  { %356 = vmatpush.msra.mxu0 %v337_v11 }
 0x3ac   :  { %357 = vmatpush.msra.mxu0 %v336_v12 }
 0x3ae   :  { %358 = vmatpush.msra.mxu0 %v335_v13 }
 0x3b0   :  { %359 = vmatpush.msra.mxu0 %v334_v14 }
 0x3b2   :  { %360 = vmatpush.msra.mxu0 %v333_v18 }
 0x3b4   :  { %361 = vmatpush.msra.mxu0 %v332_v21 }
 0x41b   :  { %v226_v23 = vpop.permute.xlu0 %225 }
 0x41c   :  { %v228_v41 = vsel %vm38_vm0, %v120_v22, %v226_v23  ;;  %v245_v24 = vrot.slane %v226_v23, 5  ;;  %vm256_vm0 = vcmask 1042432   ;;  %v331_v22 = vld [vmem:[%s768_s3] sm:$0xff] }
 0x41d   :  { %v240_v25 = vrot.slane %v228_v41, 6  ;;  %v232_v27 = vrot.slane %v228_v41, 7  ;;  %v244_v28 = vrot.slane %v228_v41, 5  ;;  %362 = vmatpush.msra.mxu0 %v331_v22  ;;  %v602_v41 = vmov 11  }
 0x41e   :  { %248 = vrot.lane.b32.xlu0 %v245_v24, %s593_s24  ;;  %v603_v24 = vmov 13  }
 0x41f   :  { %241 = vrot.lane.b32.xlu1 %v240_v25, %s594_s25 }
 0x426   :  { %235 = vrot.lane.b32.xlu0 %v232_v27, %s588_s14 }
 0x427   :  { %280 = vperm.xlu1 %546, %v701_v20  }
 0x42e   :  { %246 = vrot.lane.b32.xlu0 %v244_v28, %s593_s24 }
 0x42f   :  { %551 = vset.pattern.permute.xlu1 %v599_v9 }
 0x436   :  { %266 = vperm.xlu0 %544, %v701_v20  }
 0x43e   :  { %547 = vset.pattern.permute.xlu0 %v597_v57 }
 0x43f   :  { %317 = vperm.xlu0 %547, %v701_v20  }
 0x447   :  { %548 = vset.pattern.permute.xlu0 %v598_v61 }
 0x448   :  { %322 = vperm.xlu0 %548, %v701_v20  }
 0x450   :  { %549 = vset.pattern.permute.xlu0 %v600_v10 }
 0x451   :  { %368 = vperm.xlu0 %549, %v634_v1  }
 0x459   :  { %552 = vset.pattern.permute.xlu0 %v599_v9 }
 0x45a   :  { %384 = vperm.xlu0 %552, %v22_v19  }
 0x462   :  { %554 = vset.pattern.permute.xlu0 %v602_v41 }
 0x463   :  { %397 = vperm.xlu0 %554, %v22_v19  }
 0x490   :  { %v249_v29 = vpop.permute.xlu0 %248 }
 0x491   :  { %v242_v36 = vpop.permute.xlu1 %241 }
 0x498   :  { %v236_v31 = vpop.permute.xlu0 %235 }
 0x499   :  { %v238_v32 = vsel %vm237_vm13, %v234_v30, %v236_v31  ;;  %v281_v50 = vpop.permute.xlu1 %280  ;;  %v604_v31 = vmov 14  }
 0x49a   :  { %v253_v34 = vsel %vm46_vm1, %v690_v33, %v238_v32  ;;  %vm286_vm1 = vcmask 537600   ;;  %559 = vset.pattern.permute.xlu0 %v604_v31 }
 0x49b   :  { %v255_v39 = vsel %vm254_vm15, %v253_v34, %v242_v36  ;;  %432 = vperm.xlu0 %559, %v634_v1  }
 0x4a0   :  { %v247_v37 = vpop.permute.xlu0 %246 }
 0x4a1   :  { %v251_v38 = vsel %vm250_vm14, %v247_v37, %v249_v29 }
 0x4a2   :  { %v257_v42 = vsel %vm256_vm0, %v255_v39, %v251_v38  ;;  %v605_v39 = vmov 4  }
 0x4a3   :  { %v263_v43 = vperm.slane %v257_v42, 0  ;;  %v276_v40 = vperm.slane %v257_v42, 2  ;;  %v269_v44 = vperm.slane %v257_v42, 1  ;;  %v283_v47 = vperm.slane %v257_v42, 3  ;;  %563 = vset.pattern.permute.xlu0 %v605_v39 }
 0x4a5   :  { %v264_v48 = vmul.f32 %v263_v43, %v261_v35  ;;  %v277_v33 = vmul.f32 %v276_v40, %v274_v45  ;;  %v284_v52 = vmul.f32 %v283_v47, %v281_v50 }
 0x4a8   :  { %v267_v46 = vpop.permute.xlu0 %266 }
 0x4a9   :  { %v270_v49 = vmul.f32 %v269_v44, %v267_v46 }
 0x4ab   :  { %v271_v51 = vadd.f32 %v270_v49, %v264_v48 }
 0x4ad   :  { %v278_v53 = vadd.f32 %v277_v33, %v271_v51 }
 0x4af   :  { %v285_v54 = vadd.f32 %v284_v52, %v278_v53 }
 0x4b1   :  { %v287_v55 = vsel %vm286_vm1, %v285_v54, 0.0  ;;  %v318_v27 = vpop.permute.xlu0 %317 }
 0x4b2   :  { %288 = vadd.xlane.f32.xlu2 %v287_v55 }
 0x4ba   :  { %v323_v35 = vpop.permute.xlu0 %322 }
 0x4c3   :  { %v369_v47 = vpop.permute.xlu0 %368 }
 0x4ca   :  { %373 = vperm.xlu2 %550, %v22_v19  }
 0x4cc   :  { %v385_v50 = vpop.permute.xlu0 %384 }
 0x4d2   :  { %553 = vset.pattern.permute.xlu2 %v602_v41 }
 0x4d3   :  { %393 = vperm.xlu2 %553, %v634_v1  }
 0x4d5   :  { %v398_v52 = vpop.permute.xlu0 %397 }
 0x4db   :  { %556 = vset.pattern.permute.xlu2 %v601_v17 }
 0x4dc   :  { %410 = vperm.xlu2 %556, %v22_v19  }
 0x4e4   :  { %558 = vset.pattern.permute.xlu2 %v603_v24 }
 0x4e5   :  { %423 = vperm.xlu2 %558, %v22_v19  }
 0x4ed   :  { %561 = vset.pattern.permute.xlu2 %v605_v39 }
 0x4ee   :  { %445 = vperm.xlu2 %561, %v634_v1  }
 0x50d   :  { %v433_v8 = vpop.permute.xlu0 %432 }
 0x525   :  { %v289_v2 = vpop.xlane.xlu2 %288 }
 0x526   :  { %v297_v3 = vmul.f32 %v296_v0, %v289_v2 }
 0x528   :  { %v715_v4 = vsub.f32 %v285_v54, %v297_v3 }
 0x52a   :  { %v299_v5 = vmul.f32 %v715_v4, %v715_v4 }
 0x52c   :  { %v300_v6 = vsel %vm286_vm1, %v299_v5, 0.0 }
 0x52d   :  { %301 = vadd.xlane.f32.xlu1 %v300_v6  ;;  %v374_v45 = vpop.permute.xlu2 %373 }
 0x535   :  { %v394_v48 = vpop.permute.xlu2 %393 }
 0x53d   :  { %v411_v33 = vpop.permute.xlu2 %410 }
 0x545   :  { %v424_v62 = vpop.permute.xlu2 %423 }
 0x546   :  { %380 = vperm.xlu1 %551, %v634_v1  }
 0x54e   :  { %555 = vset.pattern.permute.xlu1 %v601_v17 }
 0x54f   :  { %406 = vperm.xlu1 %555, %v634_v1  }
 0x557   :  { %557 = vset.pattern.permute.xlu1 %v603_v24 }
 0x558   :  { %419 = vperm.xlu1 %557, %v634_v1  }
 0x560   :  { %560 = vset.pattern.permute.xlu1 %v604_v31 }
 0x561   :  { %436 = vperm.xlu1 %560, %v22_v19  }
 0x569   :  { %562 = vset.pattern.permute.xlu1 %v605_v39 }
 0x56a   :  { %449 = vperm.xlu1 %562, %v22_v19   ;;  %v446_v19 = vpop.permute.xlu2 %445 }
 0x5a0   :  { %v302_v15 = vpop.xlane.xlu1 %301 }
 0x5a1   :  { %v303_v16 = vmul.f32 %v302_v15, %v296_v0 }
 0x5a3   :  { %v304_v20 = vadd.f32 1e-05, %v303_v16 }
 0x5a5   :  { %574 = vrsqrt.f32 %v304_v20  ;;  %vm311_vm4 = vweird.f32 %v304_v20 }
 0x5ab   :  { %v575_v23 = vpop.eup %574 }
 0x5ac   :  { %v306_v25 = vmul.f32 %v575_v23, %v304_v20  ;;  %vm312_vm3 = vweird.f32 %v575_v23 }
 0x5ad   :  { %vm313_vm5 = vmor %vm311_vm4, %vm312_vm3 }
 0x5ae   :  { %v307_v26 = vmul.f32 %v575_v23, %v306_v25 }
 0x5b0   :  { %v308_v28 = vmul.f32 0.5, %v307_v26 }
 0x5b2   :  { %v309_v29 = vsub.f32 1.5, %v308_v28 }
 0x5b4   :  { %v310_v30 = vmul.f32 %v575_v23, %v309_v29 }
 0x5b6   :  { %v314_v32 = vsel %vm313_vm5, %v575_v23, %v310_v30 }
 0x5b7   :  { %v315_v34 = vmul.f32 %v314_v32, %v715_v4 }
 0x5b8   :  { %v381_v46 = vpop.permute.xlu1 %380 }
 0x5b9   :  { %v320_v36 = vmul.f32 %v318_v27, %v315_v34 }
 0x5bb   :  { %v325_v37 = vadd.f32 %v323_v35, %v320_v36 }
 0x5bd   :  { %v326_v38 = vadd.f32 3.0, %v325_v37 }
 0x5bf   :  { %v327_v42 = vmax.f32 %v326_v38, 0.0 }
 0x5c1   :  { %v328_v43 = vmin.f32 %v327_v42, 6.0  ;;  %v407_v49 = vpop.permute.xlu1 %406 }
 0x5c3   :  { %v329_v40 = vmul.f32 %v328_v43, %v325_v37 }
 0x5c5   :  { %v330_v44 = vmul.f32 0.16666667, %v329_v40 }
 0x5c7   :  { %499 = vmatmul.msk.f32.vlgmr.msra.gmra.mxu0 %vm340_vm6, %v330_v44 }
 0x5ca   :  { %v420_v51 = vpop.permute.xlu1 %419 }
 0x5d3   :  { %v437_v1 = vpop.permute.xlu1 %436 }
 0x5dc   :  { %v450_v20 = vpop.permute.xlu1 %449 }
 0x644   :  { %v364_v53 = vpop.f32.mrf.mxu0 }
 0x645   :  { %v376_v54 = vperm.slane %v364_v53, 0  ;;  %v387_v55 = vperm.slane %v364_v53, 1  ;;  %v400_v56 = vperm.slane %v364_v53, 2  ;;  %v413_v59 = vperm.slane %v364_v53, 3 }
 0x646   :  { %v426_v63 = vperm.slane %v364_v53, 4  ;;  %v439_v5 = vperm.slane %v364_v53, 5 }
 0x647   :  { %v377_v57 = vmul.f32 %v376_v54, %v369_v47  ;;  %v388_v58 = vmul.f32 %v387_v55, %v381_v46  ;;  %v378_v60 = vmul.f32 %v376_v54, %v374_v45  ;;  %v389_v61 = vmul.f32 %v387_v55, %v385_v50 }
 0x648   :  { %v401_v2 = vmul.f32 %v400_v56, %v394_v48  ;;  %v402_v4 = vmul.f32 %v400_v56, %v398_v52  ;;  %v414_v7 = vmul.f32 %v413_v59, %v407_v49  ;;  %v415_v10 = vmul.f32 %v413_v59, %v411_v33 }
 0x649   :  { %v390_v0 = vadd.f32 %v388_v58, %v377_v57  ;;  %v391_v3 = vadd.f32 %v389_v61, %v378_v60  ;;  %v427_v11 = vmul.f32 %v426_v63, %v420_v51  ;;  %v428_v14 = vmul.f32 %v426_v63, %v424_v62 }
 0x64a   :  { %v440_v15 = vmul.f32 %v439_v5, %v433_v8  ;;  %v441_v17 = vmul.f32 %v439_v5, %v437_v1 }
 0x64b   :  { %v403_v6 = vadd.f32 %v401_v2, %v390_v0  ;;  %v404_v9 = vadd.f32 %v402_v4, %v391_v3 }
 0x64d   :  { %v416_v12 = vadd.f32 %v414_v7, %v403_v6  ;;  %v417_v13 = vadd.f32 %v415_v10, %v404_v9 }
 0x64f   :  { %v429_v16 = vadd.f32 %v427_v11, %v416_v12  ;;  %v430_v18 = vadd.f32 %v428_v14, %v417_v13 }
 0x651   :  { %v442_v21 = vadd.f32 %v440_v15, %v429_v16  ;;  %v443_v22 = vadd.f32 %v441_v17, %v430_v18 }
 0x653   :  { %v452_v23 = vadd.f32 %v446_v19, %v442_v21  ;;  %v453_v41 = vadd.f32 %v450_v20, %v443_v22 }
 0x655   :  { %v500_v24 = vmul.f32 -1.442695, %v452_v23  ;;  %v501_v25 = vmul.f32 -1.442695, %v453_v41 }
 0x657   :  { %576 = vpow2.f32 %v500_v24 }
 0x658   :  { %578 = vpow2.f32 %v501_v25 }
 0x65d   :  { %v577_v26 = vpop.eup %576 }
 0x65e   :  { %v579_v27 = vpop.eup %578  ;;  %v460_v28 = vadd.f32 1.0, %v577_v26 }
 0x65f   :  { %v461_v29 = vadd.f32 1.0, %v579_v27 }
 0x660   :  { %580 = vrcp.f32 %v460_v28  ;;  %v473_v37 = vand.u32 2147483648, %v460_v28  ;;  %v471_v42 = vand.u32 2147483647, %v460_v28  ;;  %vm467_vm9 = vweird.f32 %v460_v28 }
 0x661   :  { %582 = vrcp.f32 %v461_v29  ;;  %v488_v38 = vand.u32 2147483648, %v461_v29  ;;  %v486_v40 = vand.u32 2147483647, %v461_v29  ;;  %vm482_vm10 = vweird.f32 %v461_v29 }
 0x662   :  { %v474_v46 = vor.u32 1.1754944e-38, %v473_v37  ;;  %vm472_vm13 = vcmp.eq.f32.partialorder %v471_v42, 8.507059e+37 }
 0x663   :  { %v489_v47 = vor.u32 1.1754944e-38, %v488_v38  ;;  %vm487_vm14 = vcmp.eq.f32.partialorder %v486_v40, 8.507059e+37 }
 0x666   :  { %v581_v30 = vpop.eup %580 }
 0x667   :  { %v583_v31 = vpop.eup %582  ;;  %v463_v32 = vmul.f32 %v581_v30, %v460_v28  ;;  %vm468_vm7 = vweird.f32 %v581_v30 }
 0x668   :  { %v478_v34 = vmul.f32 %v583_v31, %v461_v29  ;;  %vm483_vm8 = vweird.f32 %v583_v31  ;;  %vm469_vm11 = vmor %vm467_vm9, %vm468_vm7 }
 0x669   :  { %v464_v35 = vsub.f32 1.0, %v463_v32  ;;  %vm484_vm12 = vmor %vm482_vm10, %vm483_vm8 }
 0x66a   :  { %v479_v36 = vsub.f32 1.0, %v478_v34 }
 0x66b   :  { %v465_v39 = vmul.f32 %v581_v30, %v464_v35 }
 0x66c   :  { %v480_v43 = vmul.f32 %v583_v31, %v479_v36 }
 0x66d   :  { %v466_v44 = vadd.f32 %v581_v30, %v465_v39 }
 0x66e   :  { %v481_v45 = vadd.f32 %v583_v31, %v480_v43 }
 0x66f   :  { %v470_v48 = vsel %vm469_vm11, %v581_v30, %v466_v44 }
 0x670   :  { %v485_v49 = vsel %vm484_vm12, %v583_v31, %v481_v45  ;;  %v475_v50 = vsel %vm472_vm13, %v474_v46, %v470_v48 }
 0x671   :  { %v490_v33 = vsel %vm487_vm14, %v489_v47, %v485_v49  ;;  %492 = vst [vmem:[%s769_s4] sm:$0xff] %v475_v50 }
 0x672   :  { %493 = vst [vmem:[%s769_s4 + $0x8] sm:$0x3] %v490_v33 }

</bundles_post_ra>
